<compile_context>
chip_gen: v5e
topology: v5e:2x2
jax: 0.10.0
libtpu: 0.0.40
codegen_flags: <defaults>
</compile_context>

<pallas_src>
import numpy as np
import jax
import jax.numpy as jnp
from jax import lax
from jax.experimental import pallas as pl
from jax.experimental.pallas import tpu as pltpu


_SQRT_2_OVER_PI = 0.7978845608028654


def _gelu_tanh(x):
    # tanh-form GELU: routes through the EUP (its own VLIW slot) instead of a
    # long VALU erf polynomial.  Max deviation from exact erf GELU ~4e-4.
    return 0.5 * x * (1.0 + jnp.tanh(_SQRT_2_OVER_PI * (x + 0.044715 * x * x * x)))


def mixer_kernel(x_ref,                      # [bt, C, P, D] f32 (native layout)
                 bn_ref,                     # [3, G, 1, 1]  packed (s1, t1, s2)
                 sh2_ref,                    # [G, L, 1]     fused b2*s2 + t2
                 w1_ref, b1_ref, w2_ref,     # tokenMixer weights (f32)
                 w3t_ref, b3_ref, w4t_ref, b4_ref,   # embeddingMixer weights (f32)
                 o_ref):                     # [bt, C, L, D] f32
    f32 = jnp.float32
    bt, C, P, D = x_ref.shape
    H1 = w1_ref.shape[0]
    L = w2_ref.shape[0]
    H2 = w3t_ref.shape[1]
    G = bt * C

    # Collapse (bt, C) -> G independent slabs; leading-dim collapse is a
    # layout no-op (lanes stay D).
    x = x_ref[...].reshape(G, P, D)

    bn = bn_ref[...]
    s1, t1, s2 = bn[0], bn[1], bn[2]                       # each [G, 1, 1]

    # norm1: eval-mode BatchNorm2d folded to per-channel affine.
    y = x * s1 + t1                                        # [G, P, D]

    # TokenMixer along the patch axis, batched over the G slabs:
    #   Linear(P->H1) -> GELU -> Linear(H1->L).
    w1b = jnp.broadcast_to(w1_ref[...], (G, H1, P))
    a = jnp.einsum('ghp,gpd->ghd', w1b, y, preferred_element_type=f32)
    a = _gelu_tanh(a + b1_ref[...])                        # [G, H1, D]
    w2b = jnp.broadcast_to(w2_ref[...], (G, L, H1))
    u = jnp.einsum('glh,ghd->gld', w2b, a, preferred_element_type=f32)

    # norm2 with the TokenMixer bias pre-folded: w = (u + b2)*s2 + t2.
    w = u * s2 + sh2_ref[...]                              # [G, L, D]

    # embeddingMixer along d_model: two plain 2-D matmuls on [G*L, D]
    # (plain w3/w4 weights — no block-diagonal kron, no relayout).
    w2d = w.reshape(G * L, D)
    h = _gelu_tanh(jnp.dot(w2d, w3t_ref[...], preferred_element_type=f32)
                   + b3_ref[...])                          # [G*L, H2]
    e = jnp.dot(h, w4t_ref[...], preferred_element_type=f32) + b4_ref[...]

    # residual, stored straight back in the native [bt, C, L, D] layout.
    o_ref[...] = (w2d + e).reshape(bt, C, L, D)


def _pick_batch_tile(B, C, P, L, D, H1, H2, vmem_budget=24 * 1024 * 1024):
    """Largest batch tile bt (dividing B) whose working set fits the budget,
    while keeping >= 2 grid steps so both v7x TensorCores get work."""
    best = 1
    for bt in range(1, B + 1):
        if B % bt:
            continue
        if B >= 2 and B // bt < 2:
            continue                      # keep >= 2 parallel steps for v7x
        g = bt * C
        work = 4 * (2 * bt * C * P * D        # double-buffered input block
                    + 2 * bt * C * L * D      # double-buffered output block
                    + g * (H1 * D + L * H2)   # activations
                    + g * (H1 * P + L * H1)   # broadcast token-mixer weights
                    + D * H2 + H2 * D)        # embedding-mixer weights
        if work <= vmem_budget:
            best = bt
    return best


def mixer_forward(x, params, bt=None):
    """x: [B, C, P, D] float32 -> [B, C, L, D] float32 (eval-mode Mixer)."""
    B, C, P, D = x.shape
    (s1, t1, s2, t2, w1, b1, w2, b2, w3, b3, w4, b4) = params
    H1 = w1.shape[0]          # pred_seq * tfactor
    L = w2.shape[0]           # pred_seq
    H2 = w3.shape[0]          # d_model * dfactor
    f32 = jnp.float32

    if bt is None:
        bt = _pick_batch_tile(B, C, P, L, D, H1, H2)
    assert B % bt == 0, (B, bt)
    G = bt * C

    # Packed per-slab BN affine params (slab g -> channel g % C).
    bn = jnp.stack([jnp.tile(s1, bt), jnp.tile(t1, bt), jnp.tile(s2, bt)])
    bn = bn.reshape(3, G, 1, 1).astype(f32)
    # b2 and norm2 folded into one shift: (u + b2)*s2 + t2 = u*s2 + (b2*s2 + t2).
    sh2 = (b2[None, :] * s2[:, None] + t2[:, None])                # [C, L]
    sh2 = jnp.tile(sh2, (bt, 1)).reshape(G, L, 1).astype(f32)

    w1f = w1.astype(f32)                      # [H1, P]
    b1f = b1.reshape(1, H1, 1).astype(f32)
    w2f = w2.astype(f32)                      # [L, H1]
    w3t = w3.T.astype(f32)                    # [D, H2]
    b3f = b3.reshape(1, H2).astype(f32)
    w4t = w4.T.astype(f32)                    # [H2, D]
    b4f = b4.reshape(1, D).astype(f32)

    # Advisory cost estimate (actual matmul work, no block-diag inflation).
    flops = 2 * B * C * D * (H1 * P + L * H1) + 2 * B * C * L * (D * H2 + H2 * D)
    transcendentals = B * C * (H1 * D + L * H2)
    bytes_accessed = 4 * (x.size + B * C * L * D + bn.size + sh2.size
                          + w1f.size + b1f.size + w2f.size
                          + w3t.size + b3f.size + w4t.size + b4f.size)
    cost = pl.CostEstimate(flops=int(flops),
                           transcendentals=int(transcendentals),
                           bytes_accessed=int(bytes_accessed))

    def inv(shape):
        # Grid-invariant operand: constant index_map + a single VMEM buffer.
        return pl.BlockSpec(shape, lambda *_: (0,) * len(shape),
                            pipeline_mode=pl.Buffered(1))

    out = pl.pallas_call(
        mixer_kernel,
        out_shape=jax.ShapeDtypeStruct((B, C, L, D), f32),
        grid=(B // bt,),
        in_specs=[
            pl.BlockSpec((bt, C, P, D), lambda i: (i, 0, 0, 0)),   # x, native layout
            inv((3, G, 1, 1)),     # packed BN scale/shift (s1, t1, s2)
            inv((G, L, 1)),        # fused b2*s2 + t2
            inv((H1, P)),          # tokenMixer W1
            inv((1, H1, 1)),       # tokenMixer b1
            inv((L, H1)),          # tokenMixer W2
            inv((D, H2)),          # embeddingMixer W3^T
            inv((1, H2)),          # embeddingMixer b3
            inv((H2, D)),          # embeddingMixer W4^T
            inv((1, D)),           # embeddingMixer b4
        ],
        out_specs=pl.BlockSpec((bt, C, L, D), lambda i: (i, 0, 0, 0)),
        compiler_params=pltpu.CompilerParams(
            dimension_semantics=("parallel",),        # >=2 steps -> both v7x TCs busy
            vmem_limit_bytes=48 * 1024 * 1024),       # < physical on v5e/v6e/v7x
        cost_estimate=cost,
    )(x.astype(f32), bn, sh2, w1f, b1f, w2f, w3t, b3f, w4t, b4f)

    return out


def mixer_reference(x, params):
    """Pure-JAX reference mirroring the PyTorch forward (eval mode, erf GELU)."""
    (s1, t1, s2, t2, w1, b1, w2, b2, w3, b3, w4, b4) = params
    gelu = lambda v: jax.nn.gelu(v, approximate=False)
    hp = lax.Precision.HIGHEST

    y = x * s1[None, :, None, None] + t1[None, :, None, None]            # norm1
    a = gelu(jnp.einsum('bcpd,hp->bchd', y, w1, precision=hp)
             + b1[None, None, :, None])
    u = jnp.einsum('bchd,lh->bcld', a, w2, precision=hp) + b2[None, None, :, None]
    w = u * s2[None, :, None, None] + t2[None, :, None, None]            # norm2
    h = gelu(jnp.einsum('bcld,kd->bclk', w, w3, precision=hp) + b3)
    e = jnp.einsum('bclk,dk->bcld', h, w4, precision=hp) + b4
    return w + e


def make_params(key, C, P, L, D, tfactor, dfactor):
    H1 = L * tfactor
    H2 = D * dfactor
    ks = jax.random.split(key, 16)
    f32 = jnp.float32

    w1 = (jax.random.normal(ks[0], (H1, P)) * 0.1).astype(f32)
    b1 = (jax.random.normal(ks[1], (H1,)) * 0.1).astype(f32)
    w2 = (jax.random.normal(ks[2], (L, H1)) * 0.1).astype(f32)
    b2 = (jax.random.normal(ks[3], (L,)) * 0.1).astype(f32)
    w3 = (jax.random.normal(ks[4], (H2, D)) * 0.1).astype(f32)
    b3 = (jax.random.normal(ks[5], (H2,)) * 0.1).astype(f32)
    w4 = (jax.random.normal(ks[6], (D, H2)) * 0.1).astype(f32)
    b4 = (jax.random.normal(ks[7], (D,)) * 0.1).astype(f32)

    eps = 1e-5
    gamma1 = (1.0 + 0.1 * jax.random.normal(ks[8], (C,))).astype(f32)
    beta1 = (0.1 * jax.random.normal(ks[9], (C,))).astype(f32)
    mean1 = (0.1 * jax.random.normal(ks[10], (C,))).astype(f32)
    var1 = (0.5 + jax.random.uniform(ks[11], (C,))).astype(f32)
    gamma2 = (1.0 + 0.1 * jax.random.normal(ks[12], (C,))).astype(f32)
    beta2 = (0.1 * jax.random.normal(ks[13], (C,))).astype(f32)
    mean2 = (0.1 * jax.random.normal(ks[14], (C,))).astype(f32)
    var2 = (0.5 + jax.random.uniform(ks[15], (C,))).astype(f32)

    s1 = gamma1 / jnp.sqrt(var1 + eps)
    t1 = beta1 - mean1 * s1
    s2 = gamma2 / jnp.sqrt(var2 + eps)
    t2 = beta2 - mean2 * s2

    return (s1, t1, s2, t2, w1, b1, w2, b2, w3, b3, w4, b4)


if __name__ == "__main__":
    # Small shapes: B=2, C=4, input_seq(P)=8, pred_seq(L)=8, d_model(D)=16,
    # tfactor=2, dfactor=2  ->  H1=16, H2=32, slabs per grid step G = bt*C = 4.
    B, C, P, L, D = 2, 4, 8, 8, 16
    tfactor, dfactor = 2, 2

    key = jax.random.PRNGKey(0)
    kx, kp = jax.random.split(key)
    x = jax.random.normal(kx, (B, C, P, D), dtype=jnp.float32)
    params = make_params(kp, C, P, L, D, tfactor, dfactor)

    out = mixer_forward(x, params)
    out = jax.block_until_ready(out)

    ref = jax.block_until_ready(mixer_reference(x, params))
    assert out.shape == (B, C, L, D), out.shape
    # f32 MXU operands; the only systematic difference is the tanh-form GELU
    # vs the exact-erf reference (<~1e-3 after propagation).
    np.testing.assert_allclose(np.asarray(out), np.asarray(ref),
                               rtol=1e-2, atol=1e-2)
    print("KERNEL_OK")
</pallas_src>

<mosaic_0001>
module attributes {stable_mosaic.version = 11 : i64} {
  func.func @mixer_kernel(%arg0: i32, %arg1: memref<1x4x8x16xf32, #tpu.memory_space<vmem>>, %arg2: memref<3x4x1x1xf32, #tpu.memory_space<vmem>>, %arg3: memref<4x8x1xf32, #tpu.memory_space<vmem>>, %arg4: memref<16x8xf32, #tpu.memory_space<vmem>>, %arg5: memref<1x16x1xf32, #tpu.memory_space<vmem>>, %arg6: memref<8x16xf32, #tpu.memory_space<vmem>>, %arg7: memref<16x32xf32, #tpu.memory_space<vmem>>, %arg8: memref<1x32xf32, #tpu.memory_space<vmem>>, %arg9: memref<32x16xf32, #tpu.memory_space<vmem>>, %arg10: memref<1x16xf32, #tpu.memory_space<vmem>>, %arg11: memref<1x4x8x16xf32, #tpu.memory_space<vmem>>) attributes {dimension_semantics = [#tpu.dimension_semantics<parallel>], iteration_bounds = array<i64: 2>, scalar_prefetch = 0 : i64, scratch_operands = 0 : i64, tpu.core_type = #tpu.core_type<tc>, window_params = [{transform_indices = @transform_0, window_bounds = array<i64: 1, 4, 8, 16>}, {pipeline_mode = #tpu.pipeline_mode<synchronous>, transform_indices = @transform_1, window_bounds = array<i64: 3, 4, 1, 1>}, {pipeline_mode = #tpu.pipeline_mode<synchronous>, transform_indices = @transform_2, window_bounds = array<i64: 4, 8, 1>}, {pipeline_mode = #tpu.pipeline_mode<synchronous>, transform_indices = @transform_3, window_bounds = array<i64: 16, 8>}, {pipeline_mode = #tpu.pipeline_mode<synchronous>, transform_indices = @transform_4, window_bounds = array<i64: 1, 16, 1>}, {pipeline_mode = #tpu.pipeline_mode<synchronous>, transform_indices = @transform_5, window_bounds = array<i64: 8, 16>}, {pipeline_mode = #tpu.pipeline_mode<synchronous>, transform_indices = @transform_6, window_bounds = array<i64: 16, 32>}, {pipeline_mode = #tpu.pipeline_mode<synchronous>, transform_indices = @transform_7, window_bounds = array<i64: 1, 32>}, {pipeline_mode = #tpu.pipeline_mode<synchronous>, transform_indices = @transform_8, window_bounds = array<i64: 32, 16>}, {pipeline_mode = #tpu.pipeline_mode<synchronous>, transform_indices = @transform_9, window_bounds = array<i64: 1, 16>}, {transform_indices = @transform_10, window_bounds = array<i64: 1, 4, 8, 16>}]} {
    %c0 = arith.constant 0 : index
    %c0_0 = arith.constant 0 : index
    %c0_1 = arith.constant 0 : index
    %c0_2 = arith.constant 0 : index
    %0 = vector.load %arg1[%c0, %c0_0, %c0_1, %c0_2] : memref<1x4x8x16xf32, #tpu.memory_space<vmem>>, vector<1x4x8x16xf32>
    %1 = vector.shape_cast %0 : vector<1x4x8x16xf32> to vector<4x8x16xf32>
    %c0_3 = arith.constant 0 : index
    %c0_4 = arith.constant 0 : index
    %c0_5 = arith.constant 0 : index
    %c0_6 = arith.constant 0 : index
    %2 = vector.load %arg2[%c0_3, %c0_4, %c0_5, %c0_6] : memref<3x4x1x1xf32, #tpu.memory_space<vmem>>, vector<3x4x1x1xf32>
    %3 = vector.extract_strided_slice %2 {offsets = [0, 0, 0, 0], sizes = [1, 4, 1, 1], strides = [1, 1, 1, 1]} : vector<3x4x1x1xf32> to vector<1x4x1x1xf32>
    %4 = vector.shape_cast %3 : vector<1x4x1x1xf32> to vector<4x1x1xf32>
    %5 = vector.extract_strided_slice %2 {offsets = [1, 0, 0, 0], sizes = [1, 4, 1, 1], strides = [1, 1, 1, 1]} : vector<3x4x1x1xf32> to vector<1x4x1x1xf32>
    %6 = vector.shape_cast %5 : vector<1x4x1x1xf32> to vector<4x1x1xf32>
    %7 = vector.extract_strided_slice %2 {offsets = [2, 0, 0, 0], sizes = [1, 4, 1, 1], strides = [1, 1, 1, 1]} : vector<3x4x1x1xf32> to vector<1x4x1x1xf32>
    %8 = vector.shape_cast %7 : vector<1x4x1x1xf32> to vector<4x1x1xf32>
    %9 = vector.broadcast %4 : vector<4x1x1xf32> to vector<4x8x16xf32>
    %10 = arith.mulf %1, %9 : vector<4x8x16xf32>
    %11 = vector.broadcast %6 : vector<4x1x1xf32> to vector<4x8x16xf32>
    %12 = arith.addf %10, %11 : vector<4x8x16xf32>
    %c0_7 = arith.constant 0 : index
    %c0_8 = arith.constant 0 : index
    %13 = vector.load %arg4[%c0_7, %c0_8] : memref<16x8xf32, #tpu.memory_space<vmem>>, vector<16x8xf32>
    %14 = vector.shape_cast %13 : vector<16x8xf32> to vector<1x16x8xf32>
    %15 = vector.broadcast %14 : vector<1x16x8xf32> to vector<4x16x8xf32>
    "tpu.trace_start"() <{level = 10 : i32, message = "ghp,gpd->ghd"}> : () -> ()
    %cst = arith.constant dense<0.000000e+00> : vector<4x16x16xf32>
    %16 = tpu.matmul %15, %12, %cst {dimension_numbers = #tpu.dot_dimension_numbers<[2], [1], [1], [2], [0, 0, 0, 1, 1, 2], [0], [0]>} : vector<4x16x8xf32>, vector<4x8x16xf32>, vector<4x16x16xf32> -> vector<4x16x16xf32>
    "tpu.trace_stop"() : () -> ()
    %c0_9 = arith.constant 0 : index
    %c0_10 = arith.constant 0 : index
    %c0_11 = arith.constant 0 : index
    %17 = vector.load %arg5[%c0_9, %c0_10, %c0_11] : memref<1x16x1xf32, #tpu.memory_space<vmem>>, vector<1x16x1xf32>
    %18 = vector.broadcast %17 : vector<1x16x1xf32> to vector<4x16x16xf32>
    %19 = arith.addf %16, %18 : vector<4x16x16xf32>
    %cst_12 = arith.constant 5.000000e-01 : f32
    %20 = vector.broadcast %cst_12 : f32 to vector<4x16x16xf32>
    %21 = arith.mulf %20, %19 : vector<4x16x16xf32>
    %cst_13 = arith.constant 4.471500e-02 : f32
    %22 = vector.broadcast %cst_13 : f32 to vector<4x16x16xf32>
    %23 = arith.mulf %22, %19 : vector<4x16x16xf32>
    %24 = arith.mulf %23, %19 : vector<4x16x16xf32>
    %25 = arith.mulf %24, %19 : vector<4x16x16xf32>
    %26 = arith.addf %19, %25 : vector<4x16x16xf32>
    %cst_14 = arith.constant 0.797884583 : f32
    %27 = vector.broadcast %cst_14 : f32 to vector<4x16x16xf32>
    %28 = arith.mulf %27, %26 : vector<4x16x16xf32>
    %29 = math.tanh %28 : vector<4x16x16xf32>
    %cst_15 = arith.constant 1.000000e+00 : f32
    %30 = vector.broadcast %cst_15 : f32 to vector<4x16x16xf32>
    %31 = arith.addf %30, %29 : vector<4x16x16xf32>
    %32 = arith.mulf %21, %31 : vector<4x16x16xf32>
    %c0_16 = arith.constant 0 : index
    %c0_17 = arith.constant 0 : index
    %33 = vector.load %arg6[%c0_16, %c0_17] : memref<8x16xf32, #tpu.memory_space<vmem>>, vector<8x16xf32>
    %34 = vector.shape_cast %33 : vector<8x16xf32> to vector<1x8x16xf32>
    %35 = vector.broadcast %34 : vector<1x8x16xf32> to vector<4x8x16xf32>
    "tpu.trace_start"() <{level = 10 : i32, message = "glh,ghd->gld"}> : () -> ()
    %cst_18 = arith.constant dense<0.000000e+00> : vector<4x8x16xf32>
    %36 = tpu.matmul %35, %32, %cst_18 {dimension_numbers = #tpu.dot_dimension_numbers<[2], [1], [1], [2], [0, 0, 0, 1, 1, 2], [0], [0]>} : vector<4x8x16xf32>, vector<4x16x16xf32>, vector<4x8x16xf32> -> vector<4x8x16xf32>
    "tpu.trace_stop"() : () -> ()
    %37 = vector.broadcast %8 : vector<4x1x1xf32> to vector<4x8x16xf32>
    %38 = arith.mulf %36, %37 : vector<4x8x16xf32>
    %c0_19 = arith.constant 0 : index
    %c0_20 = arith.constant 0 : index
    %c0_21 = arith.constant 0 : index
    %39 = vector.load %arg3[%c0_19, %c0_20, %c0_21] : memref<4x8x1xf32, #tpu.memory_space<vmem>>, vector<4x8x1xf32>
    %40 = vector.broadcast %39 : vector<4x8x1xf32> to vector<4x8x16xf32>
    %41 = arith.addf %38, %40 : vector<4x8x16xf32>
    %42 = vector.shape_cast %41 : vector<4x8x16xf32> to vector<32x16xf32>
    %c0_22 = arith.constant 0 : index
    %c0_23 = arith.constant 0 : index
    %43 = vector.load %arg7[%c0_22, %c0_23] : memref<16x32xf32, #tpu.memory_space<vmem>>, vector<16x32xf32>
    %cst_24 = arith.constant dense<0.000000e+00> : vector<32x32xf32>
    %44 = tpu.matmul %42, %43, %cst_24 {dimension_numbers = #tpu.dot_dimension_numbers<[1], [0], [0], [1], [0, 0, 1, 1], [], []>} : vector<32x16xf32>, vector<16x32xf32>, vector<32x32xf32> -> vector<32x32xf32>
    %c0_25 = arith.constant 0 : index
    %c0_26 = arith.constant 0 : index
    %45 = vector.load %arg8[%c0_25, %c0_26] : memref<1x32xf32, #tpu.memory_space<vmem>>, vector<1x32xf32>
    %46 = vector.broadcast %45 : vector<1x32xf32> to vector<32x32xf32>
    %47 = arith.addf %44, %46 : vector<32x32xf32>
    %cst_27 = arith.constant 5.000000e-01 : f32
    %48 = vector.broadcast %cst_27 : f32 to vector<32x32xf32>
    %49 = arith.mulf %48, %47 : vector<32x32xf32>
    %cst_28 = arith.constant 4.471500e-02 : f32
    %50 = vector.broadcast %cst_28 : f32 to vector<32x32xf32>
    %51 = arith.mulf %50, %47 : vector<32x32xf32>
    %52 = arith.mulf %51, %47 : vector<32x32xf32>
    %53 = arith.mulf %52, %47 : vector<32x32xf32>
    %54 = arith.addf %47, %53 : vector<32x32xf32>
    %cst_29 = arith.constant 0.797884583 : f32
    %55 = vector.broadcast %cst_29 : f32 to vector<32x32xf32>
    %56 = arith.mulf %55, %54 : vector<32x32xf32>
    %57 = math.tanh %56 : vector<32x32xf32>
    %cst_30 = arith.constant 1.000000e+00 : f32
    %58 = vector.broadcast %cst_30 : f32 to vector<32x32xf32>
    %59 = arith.addf %58, %57 : vector<32x32xf32>
    %60 = arith.mulf %49, %59 : vector<32x32xf32>
    %c0_31 = arith.constant 0 : index
    %c0_32 = arith.constant 0 : index
    %61 = vector.load %arg9[%c0_31, %c0_32] : memref<32x16xf32, #tpu.memory_space<vmem>>, vector<32x16xf32>
    %cst_33 = arith.constant dense<0.000000e+00> : vector<32x16xf32>
    %62 = tpu.matmul %60, %61, %cst_33 {dimension_numbers = #tpu.dot_dimension_numbers<[1], [0], [0], [1], [0, 0, 1, 1], [], []>} : vector<32x32xf32>, vector<32x16xf32>, vector<32x16xf32> -> vector<32x16xf32>
    %c0_34 = arith.constant 0 : index
    %c0_35 = arith.constant 0 : index
    %63 = vector.load %arg10[%c0_34, %c0_35] : memref<1x16xf32, #tpu.memory_space<vmem>>, vector<1x16xf32>
    %64 = vector.broadcast %63 : vector<1x16xf32> to vector<32x16xf32>
    %65 = arith.addf %62, %64 : vector<32x16xf32>
    %66 = arith.addf %42, %65 : vector<32x16xf32>
    %67 = vector.shape_cast %66 : vector<32x16xf32> to vector<1x4x8x16xf32>
    %c0_36 = arith.constant 0 : index
    %c0_37 = arith.constant 0 : index
    %c0_38 = arith.constant 0 : index
    %c0_39 = arith.constant 0 : index
    %68 = vector.load %arg11[%c0_36, %c0_37, %c0_38, %c0_39] : memref<1x4x8x16xf32, #tpu.memory_space<vmem>>, vector<1x4x8x16xf32>
    tpu.vector_store %arg11[%c0_36, %c0_37, %c0_38, %c0_39], %67 {strides = array<i32>} : memref<1x4x8x16xf32, #tpu.memory_space<vmem>>, vector<1x4x8x16xf32>,
    return
  }
  func.func @transform_0(%arg0: i32) -> (i32, i32, i32, i32) {
    %c0_i32 = arith.constant 0 : i32
    %c0_i32_0 = arith.constant 0 : i32
    %c0_i32_1 = arith.constant 0 : i32
    %c0_i32_2 = arith.constant 0 : i32
    return %arg0, %c0_i32, %c0_i32_0, %c0_i32_1 : i32, i32, i32, i32
  }
  func.func @transform_1(%arg0: i32) -> (i32, i32, i32, i32) {
    %c0_i32 = arith.constant 0 : i32
    %c0_i32_0 = arith.constant 0 : i32
    %c0_i32_1 = arith.constant 0 : i32
    %c0_i32_2 = arith.constant 0 : i32
    %c0_i32_3 = arith.constant 0 : i32
    return %c0_i32, %c0_i32_0, %c0_i32_1, %c0_i32_2 : i32, i32, i32, i32
  }
  func.func @transform_2(%arg0: i32) -> (i32, i32, i32) {
    %c0_i32 = arith.constant 0 : i32
    %c0_i32_0 = arith.constant 0 : i32
    %c0_i32_1 = arith.constant 0 : i32
    %c0_i32_2 = arith.constant 0 : i32
    return %c0_i32, %c0_i32_0, %c0_i32_1 : i32, i32, i32
  }
  func.func @transform_3(%arg0: i32) -> (i32, i32) {
    %c0_i32 = arith.constant 0 : i32
    %c0_i32_0 = arith.constant 0 : i32
    %c0_i32_1 = arith.constant 0 : i32
    return %c0_i32, %c0_i32_0 : i32, i32
  }
  func.func @transform_4(%arg0: i32) -> (i32, i32, i32) {
    %c0_i32 = arith.constant 0 : i32
    %c0_i32_0 = arith.constant 0 : i32
    %c0_i32_1 = arith.constant 0 : i32
    %c0_i32_2 = arith.constant 0 : i32
    return %c0_i32, %c0_i32_0, %c0_i32_1 : i32, i32, i32
  }
  func.func @transform_5(%arg0: i32) -> (i32, i32) {
    %c0_i32 = arith.constant 0 : i32
    %c0_i32_0 = arith.constant 0 : i32
    %c0_i32_1 = arith.constant 0 : i32
    return %c0_i32, %c0_i32_0 : i32, i32
  }
  func.func @transform_6(%arg0: i32) -> (i32, i32) {
    %c0_i32 = arith.constant 0 : i32
    %c0_i32_0 = arith.constant 0 : i32
    %c0_i32_1 = arith.constant 0 : i32
    return %c0_i32, %c0_i32_0 : i32, i32
  }
  func.func @transform_7(%arg0: i32) -> (i32, i32) {
    %c0_i32 = arith.constant 0 : i32
    %c0_i32_0 = arith.constant 0 : i32
    %c0_i32_1 = arith.constant 0 : i32
    return %c0_i32, %c0_i32_0 : i32, i32
  }
  func.func @transform_8(%arg0: i32) -> (i32, i32) {
    %c0_i32 = arith.constant 0 : i32
    %c0_i32_0 = arith.constant 0 : i32
    %c0_i32_1 = arith.constant 0 : i32
    return %c0_i32, %c0_i32_0 : i32, i32
  }
  func.func @transform_9(%arg0: i32) -> (i32, i32) {
    %c0_i32 = arith.constant 0 : i32
    %c0_i32_0 = arith.constant 0 : i32
    %c0_i32_1 = arith.constant 0 : i32
    return %c0_i32, %c0_i32_0 : i32, i32
  }
  func.func @transform_10(%arg0: i32) -> (i32, i32, i32, i32) {
    %c0_i32 = arith.constant 0 : i32
    %c0_i32_0 = arith.constant 0 : i32
    %c0_i32_1 = arith.constant 0 : i32
    %c0_i32_2 = arith.constant 0 : i32
    return %arg0, %c0_i32, %c0_i32_0, %c0_i32_1 : i32, i32, i32, i32
  }
}

</mosaic_0001>

<bundles_post_ra>
// kernel: tpu_custom_call.1
= control target key start
LH: loop header
LB: loop body
LE: loop exit
PB: predicated region body
PF: predicated region fallthrough
CT: control target
= control target key end

     0   :  { %15 = vsyncpa [#allocation3], 0  ;;  %s1459_s0 = inlined_call_operand.vmem [shape: f32[2,4,8,16], index: 0, kind: input, shape index: {}]   ;;  %s1460_s1 = inlined_call_operand.vmem [shape: f32[3,4,1,1], index: 1, kind: input, shape index: {}]   ;;  %s1461_s2 = inlined_call_operand.vmem [shape: f32[4,8,1], index: 2, kind: input, shape index: {}]   ;;  %s1462_s3 = inlined_call_operand.vmem [shape: f32[16,8], index: 3, kind: input, shape index: {}]   ;;  %s1463_s4 = inlined_call_operand.vmem [shape: f32[1,16,1], index: 4, kind: input, shape index: {}]   ;;  %s1464_s5 = inlined_call_operand.vmem [shape: f32[8,16], index: 5, kind: input, shape index: {}]   ;;  %s1465_s6 = inlined_call_operand.vmem [shape: f32[16,32], index: 6, kind: input, shape index: {}]   ;;  %s1466_s7 = inlined_call_operand.vmem [shape: f32[1,32], index: 7, kind: input, shape index: {}]   ;;  %s1467_s8 = inlined_call_operand.vmem [shape: f32[32,16], index: 8, kind: input, shape index: {}]   ;;  %s1468_s9 = inlined_call_operand.vmem [shape: f32[1,16], index: 9, kind: input, shape index: {}]   ;;  %s1469_s10 = inlined_call_operand.hbm [shape: f32[2,4,8,16], index: 10, kind: output, shape index: {}]  }
   0x1   :  { %17 = vsyncpa [#allocation3 + $0x1], 0  ;;  %s1220_s13 = smov 0   ;;  %s1222_s14 = smov 0  }
   0x2   :  { %s1224_s15 = smov 0   ;;  %s1226_s16 = smov 0  }
   0x3 LB: > { %s1241_s17 = sadd.s32 4294967295, %s1160_s16   ;;  %s975_s18 = sadd.s32 4294967294, %s1160_s16   ;;  %s1160_s16 = sphi %s1226_s16, %s1475_s16   ;;  %s1156_s15 = sphi %s1224_s15, %s1474_s15   ;;  %s1152_s14 = sphi %s1222_s14, %s1473_s14   ;;  %s1148_s13 = sphi %s1220_s13, %s1472_s13  }
   0x4   : > { %s1245_s19 = sadd.s32 1, %s1160_s16   ;;  %s245_s20 = sadd.s32 1, %s1156_s15 }
   0x5   : > { %s242_s21 = ssub.s32 %s1160_s16, %s1245_s19  ;;  %p255_p0 = scmp.ne.s32.totalorder %s1156_s15, %s1152_s14 }
   0x6   : > { %p243_p1 = scmp.eq.s32.totalorder %s242_s21, 0  ;;  %p256_p2 = scmp.eq.s32.totalorder %s1241_s17, 1 }
   0x7   : > { %p261_p3 = scmp.ne.s32.totalorder %s1152_s14, %s1148_s13  ;;  %p262_p4 = scmp.eq.s32.totalorder %s975_s18, 1 }
   0x8   : > { %s1256_s22 = scalar_select %p243_p1, %s1156_s15, %s245_s20  }
   0x9   : > { %p1258_p5 = por %p256_p2, %p255_p0  ;;  %p1262_p6 = por %p262_p4, %p261_p3 }
   0xa   : > { %p978_p7 = scmp.ge.s32.totalorder %s1160_s16, 1  ;;  %p315_p8 = scmp.lt.s32.totalorder %s1160_s16, 3 }
   0xc   : > { %p316_p9 = pnand %p978_p7, %p315_p8 }
   0xd   : > { %p353_p10 = scmp.lt.s32.totalorder (!%p316_p9), %s1241_s17, 1  ;;  %s350_s11 = sand.u32 (!%p316_p9), 1, %s1152_s14  }
   0xe   : > { %319 = sbr.rel (%p316_p9) target bundleno = 753 (0x2f1), region = 60  ;;  %s979_s20 = sshll.u32 (!%p316_p9), %s350_s11, 5 }
   0xf   : > { %s352_s21 = scalar_lea.vmem (!%p316_p9), [#allocation2], %s979_s20  ;;  %s1008_s25 = sshll.u32 (!%p316_p9), %s1241_s17, 5 }
  0x10   : > { %s1118_s26 = scalar_lea.hbm (!%p316_p9), %s1469_s10, 64 }
  0x13   : > { %v1060_v0 = vld [vmem:[%s1460_s1 + $0x3] ss:$0 sm:$0xff]  ;;  %v1162_v1 = vmov 0   ;;  %v1061_v2 = vld [vmem:[%s1460_s1 + $0x2] ss:$0 sm:$0xff]  ;;  %v433_v9 = vld [vmem:[%s1463_s4 + $0x8] sm:$0xff] }
  0x14   : > { %1059 = vset.pattern.permute.xlu2 %v1162_v1  ;;  %1058 = vset.pattern.permute.xlu1 %v1162_v1  ;;  %v1062_v3 = vld [vmem:[%s1460_s1] ss:$0 sm:$0xff]  ;;  %v1063_v4 = vld [vmem:[%s1460_s1 + $0x7] ss:$0 sm:$0xff]  ;;  %v1064_v5 = vld [vmem:[%s1460_s1 + $0x6] ss:$0 sm:$0xff] }
  0x15   : > { %1057 = vset.pattern.permute.xlu0 %v1162_v1  ;;  %395 = vperm.xlu1 %1058, %v1060_v0   ;;  %v1065_v6 = vld [vmem:[%s1460_s1 + $0x4] ss:$0 sm:$0xff]  ;;  %v1066_v7 = vld [vmem:[%s1460_s1 + $0x5] ss:$0 sm:$0xff]  ;;  %v1067_v8 = vld [vmem:[%s1460_s1 + $0x1] ss:$0 sm:$0xff] }
  0x16   : > { %391 = vperm.xlu0 %1057, %v1061_v2   ;;  %383 = vperm.xlu2 %1059, %v1062_v3   ;;  %v1068_v10 = vld [vmem:[%s1460_s1 + $0xa] ss:$0 sm:$0xff]  ;;  %v432_v11 = vld [vmem:[%s1463_s4] sm:$0xff]  ;;  %v730_v12 = vld [vmem:[%s1461_s2 + $0x10] sm:$0xff]  ;;  %s354_s28 = scalar_select %p353_p10, %s1241_s17, 1  ;;  %vm444_vm0 = vcmask 64512  }
  0x17   : > { %v731_v13 = vld [vmem:[%s1461_s2 + $0x18] sm:$0xff]  ;;  %v1069_v14 = vld [vmem:[%s1460_s1 + $0xb] ss:$0 sm:$0xff]  ;;  %v1071_v15 = vld [vmem:[%s1460_s1 + $0x8] ss:$0 sm:$0xff]  ;;  %vm616_vm1 = vcmask 130048  }
  0x18   : > { %v1070_v16 = vld [vmem:[%s1460_s1 + $0x9] ss:$0 sm:$0xff]  ;;  %v728_v17 = vld [vmem:[%s1461_s2] sm:$0xff]  ;;  %s1007_s29 = sshll.u32 %s354_s28, 5  ;;  %vm847_vm2 = vcmask 261120   ;;  %s909_s28 = scalar_lea.hbm %s1469_s10, %s1008_s25 }
  0x19   : > { %v729_v18 = vld [vmem:[%s1461_s2 + $0x8] sm:$0xff]  ;;  %s357_s12 = scalar_lea.vmem %s1459_s0, %s1007_s29  ;;  %v430_v24 = vld [vmem:[%s1462_s3] sm:$0xff]  ;;  %s910_s29 = sshll.u32 %s352_s21, 4  ;;  %s911_s29 = int_to_ptr.vmem [resolvable:$true] %s910_s29 }
  0x1a   : > { %v358_v20 = vld [vmem:[%s357_s12] sm:$0xff]  ;;  %v431_v25 = vld [vmem:[%s1462_s3 + $0x8] sm:$0xff]  ;;  %v361_v28 = vld [vmem:[%s357_s12 + $0x18] sm:$0xff]  ;;  %s912_s30 = sshll.u32 %s909_s28, 4  ;;  %s898_s17 = scalar_lea.sflag [#allocation3], %s350_s11  ;;  %s913_s30 = int_to_ptr.hbm [resolvable:$true] %s912_s30 }
  0x1b   : > { %v360_v30 = vld [vmem:[%s357_s12 + $0x10] sm:$0xff]  ;;  %v359_v36 = vld [vmem:[%s357_s12 + $0x8] sm:$0xff]  ;;  %s1112_s12 = sshra.s32 %s913_s30, 4  ;;  %s1113_s12 = int_to_ptr.hbm [resolvable:$true] %s1112_s12 }
  0x1c   : > { %s1114_s18 = scalar_lea.hbm %s1113_s12, 32  ;;  %p1119_p0 = scmp.lt.s32.totalorder %s1113_s12, %s1469_s10 }
  0x1d   : > { %423 = vperm.xlu1 %1058, %v1063_v4   ;;  %p1115_p11 = scmp.ne.s32.totalorder %s1113_s12, %s1114_s18  ;;  %p1120_p1 = scmp.lt.s32.totalorder %s1118_s26, %s1114_s18 }
  0x1e   : > { %419 = vperm.xlu0 %1057, %v1064_v5   ;;  %411 = vperm.xlu2 %1059, %v1065_v6   ;;  %v1349_v6 = vld [vmem:[%s1464_s5] sm:$0xff] }
  0x1f   : > { %p1116_p12 = pnand %p1115_p11, %p1258_p5  ;;  %p1121_p2 = por %p1120_p1, %p1119_p0 }
  0x21   : > { %p1117_p13 = pneg %p1116_p12 }
  0x23   : > { %p1122_p3 = pnand %p1121_p2, %p1117_p13 }
  0x25   : > { %415 = vperm.xlu1 %1058, %v1066_v7  }
  0x26   : > { %387 = vperm.xlu0 %1057, %v1067_v8   ;;  %441 = vperm.xlu2 %1059, %v433_v9  }
  0x2d   : > { %717 = vperm.xlu1 %1058, %v1068_v10  }
  0x2e   : > { %436 = vperm.xlu0 %1057, %v432_v11   ;;  %744 = vperm.xlu2 %1059, %v730_v12  }
  0x35   : > { %749 = vperm.xlu1 %1058, %v731_v13  }
  0x36   : > { %721 = vperm.xlu0 %1057, %v1069_v14   ;;  %709 = vperm.xlu2 %1059, %v1071_v15  }
  0x3d   : > { %713 = vperm.xlu1 %1058, %v1070_v16  }
  0x3e   : > { %734 = vperm.xlu0 %1057, %v728_v17   ;;  %739 = vperm.xlu2 %1059, %v729_v18  }
  0x70   : > { %v384_v19 = vpop.permute.xlu2 %383 }
  0x71   : > { %v398_v21 = vmul.f32 %v384_v19, %v358_v20 }
  0x78   : > { %v412_v22 = vpop.permute.xlu2 %411 }
  0x79   : > { %v426_v23 = vadd.f32 %v412_v22, %v398_v21 }
  0x7b   : > { %466 = vmatpush.msra.mxu0 %v426_v23 }
  0x7c   : > { %982 = vmatmul.msk.f32.vlgmr.msra.gmra.mxu0 %vm444_vm0, %v430_v24 }
  0x80   : > { %v442_v47 = vpop.permute.xlu2 %441 }
  0x84   : > { %983 = vmatmul.msk.f32.gmra.mxu0 %vm444_vm0, %v431_v25 }
  0x87   : > { %v396_v26 = vpop.permute.xlu1 %395 }
  0x88   : > { %v392_v27 = vpop.permute.xlu0 %391  ;;  %v401_v29 = vmul.f32 %v396_v26, %v361_v28 }
  0x89   : > { %v400_v31 = vmul.f32 %v392_v27, %v360_v30 }
  0x8f   : > { %v424_v32 = vpop.permute.xlu1 %423 }
  0x90   : > { %v420_v33 = vpop.permute.xlu0 %419  ;;  %v429_v34 = vadd.f32 %v424_v32, %v401_v29 }
  0x91   : > { %v428_v35 = vadd.f32 %v420_v33, %v400_v31 }
  0x92   : > { %535 = vmatpush.msra.mxu3 %v429_v34 }
  0x93   : > { %512 = vmatpush.msra.mxu2 %v428_v35  ;;  %988 = vmatmul.msk.f32.vlgmr.msra.gmra.mxu3 %vm444_vm0, %v430_v24 }
  0x94   : > { %986 = vmatmul.msk.f32.vlgmr.msra.gmra.mxu2 %vm444_vm0, %v430_v24 }
  0x97   : > { %v416_v39 = vpop.permute.xlu1 %415 }
  0x98   : > { %v388_v37 = vpop.permute.xlu0 %387 }
  0x99   : > { %v399_v38 = vmul.f32 %v388_v37, %v359_v36 }
  0x9b   : > { %989 = vmatmul.msk.f32.gmra.mxu3 %vm444_vm0, %v431_v25  ;;  %v427_v40 = vadd.f32 %v416_v39, %v399_v38 }
  0x9c   : > { %987 = vmatmul.msk.f32.gmra.mxu2 %vm444_vm0, %v431_v25 }
  0x9d   : > { %489 = vmatpush.msra.mxu1 %v427_v40 }
  0x9e   : > { %984 = vmatmul.msk.f32.vlgmr.msra.gmra.mxu1 %vm444_vm0, %v430_v24 }
  0xa0   : > { %v437_v41 = vpop.permute.xlu0 %436 }
  0xa6   : > { %985 = vmatmul.msk.f32.gmra.mxu1 %vm444_vm0, %v431_v25 }
  0xf9   : > { %v468_v42 = vpop.f32.mrf.mxu0 }
  0xfa   : > { %v469_v43 = vadd.f32 %v468_v42, %v437_v41 }
  0xfc   : > { %v551_v44 = vmul.f32 0.044715, %v469_v43  ;;  %v543_v3 = vmul.f32 0.5, %v469_v43 }
  0xfe   : > { %v559_v45 = vmul.f32 %v551_v44, %v469_v43 }
 0x100   : > { %v567_v46 = vmul.f32 %v559_v45, %v469_v43 }
 0x101   : > { %v471_v48 = vpop.f32.mrf.mxu0 }
 0x102   : > { %v472_v49 = vadd.f32 %v471_v48, %v442_v47  ;;  %v575_v51 = vadd.f32 %v567_v46, %v469_v43 }
 0x104   : > { %v552_v50 = vmul.f32 0.044715, %v472_v49  ;;  %v583_v54 = vmul.f32 0.7978846, %v575_v51  ;;  %v544_v60 = vmul.f32 0.5, %v472_v49 }
 0x106   : > { %v560_v52 = vmul.f32 %v552_v50, %v472_v49  ;;  %1074 = vtanh.f32 %v583_v54 }
 0x108   : > { %v568_v53 = vmul.f32 %v560_v52, %v472_v49 }
 0x10a   : > { %v576_v55 = vadd.f32 %v568_v53, %v472_v49 }
 0x10c   : > { %v584_v56 = vmul.f32 0.7978846, %v576_v55  ;;  %v1075_v57 = vpop.eup %1074 }
 0x10d   : > { %v599_v62 = vadd.f32 1.0, %v1075_v57 }
 0x10e   : > { %1076 = vtanh.f32 %v584_v56 }
 0x10f   : > { %v607_v5 = vmul.f32 %v599_v62, %v543_v3 }
 0x114   : > { %v1077_v58 = vpop.eup %1076 }
 0x115   : > { %v600_v61 = vadd.f32 1.0, %v1077_v58 }
 0x116   : > { %v537_v59 = vpop.f32.mrf.mxu3 }
 0x117   : > { %v514_v63 = vpop.f32.mrf.mxu2  ;;  %v1341_v0 = vadd.f32 %v537_v59, %v437_v41  ;;  %v608_v2 = vmul.f32 %v600_v61, %v544_v60 }
 0x118   : > { %v1343_v1 = vadd.f32 %v514_v63, %v437_v41 }
 0x119   : > { %v557_v4 = vmul.f32 0.044715, %v1341_v0  ;;  %634 = vmatpush.msrb.mxu0 %v608_v2  ;;  %v549_v56 = vmul.f32 0.5, %v1341_v0 }
 0x11a   : > { %v555_v7 = vmul.f32 0.044715, %v1343_v1  ;;  %v547_v58 = vmul.f32 0.5, %v1343_v1 }
 0x11b   : > { %v491_v8 = vpop.f32.mrf.mxu1  ;;  %v565_v9 = vmul.f32 %v557_v4, %v1341_v0  ;;  %635 = vmatpush.msrb.mxu0 %v607_v5  ;;  %v756_v5 = vld [vmem:[%s1465_s6] sm:$0xff] }
 0x11c   : > { %v1353_v10 = vadd.f32 %v491_v8, %v437_v41  ;;  %v563_v11 = vmul.f32 %v555_v7, %v1343_v1  ;;  %990 = vmatmul.msk.f32.vlgmr.msrb.gmra.mxu0 %vm616_vm1, %v1349_v6  ;;  %v745_v7 = vpop.permute.xlu2 %744  ;;  %v722_v8 = vpop.permute.xlu0 %721 }
 0x11d   : > { %v573_v12 = vmul.f32 %v565_v9, %v1341_v0 }
 0x11e   : > { %v540_v13 = vpop.f32.mrf.mxu3  ;;  %v571_v14 = vmul.f32 %v563_v11, %v1343_v1  ;;  %v553_v15 = vmul.f32 0.044715, %v1353_v10  ;;  %v545_v4 = vmul.f32 0.5, %v1353_v10 }
 0x11f   : > { %v517_v16 = vpop.f32.mrf.mxu2  ;;  %v541_v17 = vadd.f32 %v540_v13, %v442_v47  ;;  %v581_v21 = vadd.f32 %v573_v12, %v1341_v0 }
 0x120   : > { %v518_v18 = vadd.f32 %v517_v16, %v442_v47  ;;  %v561_v19 = vmul.f32 %v553_v15, %v1353_v10  ;;  %v579_v23 = vadd.f32 %v571_v14, %v1343_v1  ;;  %v757_v1 = vld [vmem:[%s1465_s6 + $0x8] sm:$0xff] }
 0x121   : > { %v558_v20 = vmul.f32 0.044715, %v541_v17  ;;  %v589_v30 = vmul.f32 0.7978846, %v581_v21  ;;  %v550_v48 = vmul.f32 0.5, %v541_v17  ;;  %788 = vmatpush.msra.mxu0 %v757_v1 }
 0x122   : > { %v556_v22 = vmul.f32 0.044715, %v518_v18  ;;  %v569_v24 = vmul.f32 %v561_v19, %v1353_v10  ;;  %v587_v32 = vmul.f32 0.7978846, %v579_v23  ;;  %v548_v51 = vmul.f32 0.5, %v518_v18 }
 0x123   : > { %v494_v25 = vpop.f32.mrf.mxu1  ;;  %v566_v26 = vmul.f32 %v558_v20, %v541_v17  ;;  %1078 = vtanh.f32 %v589_v30  ;;  %789 = vmatpush.msra.mxu0 %v756_v5  ;;  %v1072_v30 = vld [vmem:[%s1466_s7] ss:$0 sm:$0xff] }
 0x124   : > { %v495_v27 = vadd.f32 %v494_v25, %v442_v47  ;;  %v564_v28 = vmul.f32 %v556_v22, %v518_v18  ;;  %v577_v34 = vadd.f32 %v569_v24, %v1353_v10  ;;  %1080 = vtanh.f32 %v587_v32  ;;  %v710_v9 = vpop.permute.xlu2 %709  ;;  %v735_v12 = vpop.permute.xlu0 %734 }
 0x125   : > { %v574_v29 = vmul.f32 %v566_v26, %v541_v17  ;;  %v842_v26 = vld [vmem:[%s1467_s8 + $0x18] sm:$0xff] }
 0x126   : > { %v572_v31 = vmul.f32 %v564_v28, %v518_v18  ;;  %v554_v33 = vmul.f32 0.044715, %v495_v27  ;;  %v585_v41 = vmul.f32 0.7978846, %v577_v34  ;;  %v546_v62 = vmul.f32 0.5, %v495_v27  ;;  %v840_v28 = vld [vmem:[%s1467_s8 + $0x8] sm:$0xff] }
 0x127   : > { %v582_v35 = vadd.f32 %v574_v29, %v541_v17  ;;  %v839_v29 = vld [vmem:[%s1467_s8] sm:$0xff] }
 0x128   : > { %v580_v36 = vadd.f32 %v572_v31, %v518_v18  ;;  %v562_v37 = vmul.f32 %v554_v33, %v495_v27 }
 0x129   : > { %v590_v38 = vmul.f32 0.7978846, %v582_v35  ;;  %v1079_v44 = vpop.eup %1078 }
 0x12a   : > { %v588_v39 = vmul.f32 0.7978846, %v580_v36  ;;  %v570_v40 = vmul.f32 %v562_v37, %v495_v27  ;;  %v1081_v45 = vpop.eup %1080  ;;  %v605_v50 = vadd.f32 1.0, %v1079_v44 }
 0x12b   : > { %1082 = vtanh.f32 %v590_v38  ;;  %v603_v53 = vadd.f32 1.0, %v1081_v45 }
 0x12c   : > { %1084 = vtanh.f32 %v588_v39  ;;  %v578_v42 = vadd.f32 %v570_v40, %v495_v27  ;;  %v613_v60 = vmul.f32 %v605_v50, %v549_v56  ;;  %v740_v18 = vpop.permute.xlu2 %739  ;;  %v841_v27 = vld [vmem:[%s1467_s8 + $0x10] sm:$0xff] }
 0x12d   : > { %1086 = vtanh.f32 %v585_v41  ;;  %v611_v61 = vmul.f32 %v603_v53, %v547_v58 }
 0x12e   : > { %v586_v43 = vmul.f32 0.7978846, %v578_v42 }
 0x130   : > { %1088 = vtanh.f32 %v586_v43 }
 0x131   : > { %v1083_v46 = vpop.eup %1082 }
 0x132   : > { %v1085_v47 = vpop.eup %1084  ;;  %v606_v49 = vadd.f32 1.0, %v1083_v46 }
 0x133   : > { %v604_v52 = vadd.f32 1.0, %v1085_v47  ;;  %v1087_v54 = vpop.eup %1086 }
 0x134   : > { %v614_v55 = vmul.f32 %v606_v49, %v550_v48  ;;  %v601_v2 = vadd.f32 1.0, %v1087_v54 }
 0x135   : > { %v612_v57 = vmul.f32 %v604_v52, %v548_v51 }
 0x136   : > { %v1089_v59 = vpop.eup %1088  ;;  %694 = vmatpush.msrb.mxu3 %v614_v55  ;;  %v609_v0 = vmul.f32 %v601_v2, %v545_v4 }
 0x137   : > { %674 = vmatpush.msrb.mxu2 %v612_v57  ;;  %v602_v63 = vadd.f32 1.0, %v1089_v59 }
 0x138   : > { %695 = vmatpush.msrb.mxu3 %v613_v60 }
 0x139   : > { %675 = vmatpush.msrb.mxu2 %v611_v61  ;;  %993 = vmatmul.msk.f32.vlgmr.msrb.gmra.mxu3 %vm616_vm1, %v1349_v6  ;;  %v610_v3 = vmul.f32 %v602_v63, %v546_v62 }
 0x13a   : > { %992 = vmatmul.msk.f32.vlgmr.msrb.gmra.mxu2 %vm616_vm1, %v1349_v6  ;;  %1011 = vmatpush.msra.mxu3 %v842_v26 }
 0x13b   : > { %654 = vmatpush.msrb.mxu1 %v610_v3  ;;  %1009 = vmatpush.msra.mxu2 %v757_v1 }
 0x13c   : > { %1012 = vmatpush.msra.mxu3 %v841_v27 }
 0x13d   : > { %655 = vmatpush.msrb.mxu1 %v609_v0  ;;  %1010 = vmatpush.msra.mxu2 %v756_v5 }
 0x13e   : > { %991 = vmatmul.msk.f32.vlgmr.msrb.gmra.mxu1 %vm616_vm1, %v1349_v6  ;;  %v718_v6 = vpop.permute.xlu1 %717  ;;  %1013 = vmatpush.msra.mxu3 %v840_v28 }
 0x13f   : > { %872 = vmatpush.msra.mxu1 %v842_v26 }
 0x140   : > { %1014 = vmatpush.msra.mxu3 %v839_v29 }
 0x141   : > { %873 = vmatpush.msra.mxu1 %v841_v27 }
 0x143   : > { %874 = vmatpush.msra.mxu1 %v840_v28 }
 0x145   : > { %875 = vmatpush.msra.mxu1 %v839_v29 }
 0x146   : > { %v750_v14 = vpop.permute.xlu1 %749 }
 0x14e   : > { %v714_v15 = vpop.permute.xlu1 %713 }
 0x199   : > { %v637_v10 = vpop.f32.mrf.mxu0 }
 0x19a   : > { %v724_v11 = vmul.f32 %v710_v9, %v637_v10 }
 0x19c   : > { %v1381_v13 = vadd.f32 %v735_v12, %v724_v11  ;;  %v1073_v12 = vld [vmem:[%s1468_s9] ss:$0 sm:$0xff] }
 0x19e   : > { %994 = vmatmul.msk.f32.vlgmr.msra.gmra.mxu0 %vm616_vm1, %v1381_v13 }
 0x1bb   : > { %v657_v16 = vpop.f32.mrf.mxu1 }
 0x1bc   : > { %v725_v17 = vmul.f32 %v714_v15, %v657_v16  ;;  %v697_v23 = vpop.f32.mrf.mxu3 }
 0x1bd   : > { %v677_v19 = vpop.f32.mrf.mxu2  ;;  %v727_v24 = vmul.f32 %v722_v8, %v697_v23 }
 0x1be   : > { %v1385_v20 = vadd.f32 %v740_v18, %v725_v17  ;;  %v726_v21 = vmul.f32 %v718_v6, %v677_v19 }
 0x1bf   : > { %v1393_v25 = vadd.f32 %v750_v14, %v727_v24 }
 0x1c0   : > { %v1387_v22 = vadd.f32 %v745_v7, %v726_v21  ;;  %995 = vmatmul.msk.f32.gmra.mxu0 %vm616_vm1, %v1385_v20 }
 0x1c2   : > { %996 = vmatmul.msk.f32.vlgmr.msra.gmra.mxu2 %vm616_vm1, %v1387_v22 }
 0x1ca   : > { %997 = vmatmul.msk.f32.gmra.mxu2 %vm616_vm1, %v1393_v25 }
 0x21b   : > { %v791_v31 = vpop.f32.mrf.mxu0 }
 0x21c   : > { %v792_v32 = vadd.f32 %v1072_v30, %v791_v31 }
 0x21e   : > { %v807_v33 = vmul.f32 0.044715, %v792_v32  ;;  %v803_v39 = vmul.f32 0.5, %v792_v32 }
 0x220   : > { %v811_v34 = vmul.f32 %v807_v33, %v792_v32 }
 0x222   : > { %v815_v35 = vmul.f32 %v811_v34, %v792_v32 }
 0x224   : > { %v819_v36 = vadd.f32 %v815_v35, %v792_v32 }
 0x226   : > { %v823_v37 = vmul.f32 0.7978846, %v819_v36 }
 0x228   : > { %1090 = vtanh.f32 %v823_v37 }
 0x22e   : > { %v1091_v38 = vpop.eup %1090 }
 0x22f   : > { %v831_v40 = vadd.f32 1.0, %v1091_v38 }
 0x231   : > { %v835_v41 = vmul.f32 %v831_v40, %v803_v39 }
 0x233   : > { %998 = vmatmul.msk.f32.vlgmr.msra.gmra.mxu1 %vm847_vm2, %v835_v41 }
 0x23d   : > { %v794_v42 = vpop.f32.mrf.mxu0 }
 0x23e   : > { %v795_v43 = vadd.f32 %v1072_v30, %v794_v42 }
 0x240   : > { %v808_v44 = vmul.f32 0.044715, %v795_v43  ;;  %v804_v60 = vmul.f32 0.5, %v795_v43 }
 0x242   : > { %v812_v45 = vmul.f32 %v808_v44, %v795_v43 }
 0x244   : > { %v816_v46 = vmul.f32 %v812_v45, %v795_v43 }
 0x245   : > { %v797_v47 = vpop.f32.mrf.mxu2 }
 0x246   : > { %v798_v48 = vadd.f32 %v1072_v30, %v797_v47  ;;  %v820_v49 = vadd.f32 %v816_v46, %v795_v43 }
 0x248   : > { %v809_v50 = vmul.f32 0.044715, %v798_v48  ;;  %v824_v51 = vmul.f32 0.7978846, %v820_v49  ;;  %v805_v1 = vmul.f32 0.5, %v798_v48 }
 0x24a   : > { %v813_v52 = vmul.f32 %v809_v50, %v798_v48  ;;  %1092 = vtanh.f32 %v824_v51 }
 0x24c   : > { %v817_v53 = vmul.f32 %v813_v52, %v798_v48 }
 0x24d   : > { %v800_v54 = vpop.f32.mrf.mxu2 }
 0x24e   : > { %v821_v55 = vadd.f32 %v817_v53, %v798_v48  ;;  %v801_v56 = vadd.f32 %v1072_v30, %v800_v54 }
 0x250   : > { %v1093_v57 = vpop.eup %1092  ;;  %v825_v58 = vmul.f32 0.7978846, %v821_v55  ;;  %v810_v59 = vmul.f32 0.044715, %v801_v56  ;;  %v806_v9 = vmul.f32 0.5, %v801_v56 }
 0x251   : > { %v832_v61 = vadd.f32 1.0, %v1093_v57 }
 0x252   : > { %1094 = vtanh.f32 %v825_v58  ;;  %v814_v62 = vmul.f32 %v810_v59, %v801_v56 }
 0x253   : > { %v836_v63 = vmul.f32 %v832_v61, %v804_v60 }
 0x254   : > { %v818_v2 = vmul.f32 %v814_v62, %v801_v56 }
 0x255   : > { %999 = vmatmul.msk.f32.gmra.mxu1 %vm847_vm2, %v836_v63 }
 0x256   : > { %v822_v3 = vadd.f32 %v818_v2, %v801_v56 }
 0x258   : > { %v1095_v4 = vpop.eup %1094  ;;  %v826_v0 = vmul.f32 0.7978846, %v822_v3 }
 0x259   : > { %v833_v5 = vadd.f32 1.0, %v1095_v4 }
 0x25a   : > { %1096 = vtanh.f32 %v826_v0 }
 0x25b   : > { %v837_v7 = vmul.f32 %v833_v5, %v805_v1 }
 0x25d   : > { %1000 = vmatmul.msk.f32.vlgmr.msra.gmra.mxu3 %vm847_vm2, %v837_v7 }
 0x260   : > { %v1097_v8 = vpop.eup %1096 }
 0x261   : > { %v834_v10 = vadd.f32 1.0, %v1097_v8 }
 0x263   : > { %v838_v11 = vmul.f32 %v834_v10, %v806_v9 }
 0x265   : > { %1001 = vmatmul.msk.f32.gmra.mxu3 %vm847_vm2, %v838_v11 }
 0x2b0   : > { %v877_v6 = vpop.f32.mrf.mxu1 }
 0x2b1   : > { %v878_v14 = vadd.f32 %v1073_v12, %v877_v6 }
 0x2b3   : > { %v889_v15 = vadd.f32 %v878_v14, %v1381_v13 }
 0x2b5   : > { %893 = vst.msk [vmem:[%s352_s21] sm:$0xff] %vm616_vm1, %v889_v15 }
 0x2d2   : > { %v880_v16 = vpop.f32.mrf.mxu1 }
 0x2d3   : > { %v881_v17 = vadd.f32 %v1073_v12, %v880_v16 }
 0x2d5   : > { %v890_v18 = vadd.f32 %v881_v17, %v1385_v20 }
 0x2d7   : > { %894 = vst.msk [vmem:[%s352_s21 + $0x8] sm:$0xff] %vm616_vm1, %v890_v18 }
 0x2e0   : > { %v883_v19 = vpop.f32.mrf.mxu3 }
 0x2e1   : > { %v884_v21 = vadd.f32 %v1073_v12, %v883_v19 }
 0x2e3   : > { %v891_v23 = vadd.f32 %v884_v21, %v1387_v22 }
 0x2e5   : > { %895 = vst.msk [vmem:[%s352_s21 + $0x10] sm:$0xff] %vm616_vm1, %v891_v23 }
 0x2e8   : > { %v886_v13 = vpop.f32.mrf.mxu3 }
 0x2e9   : > { %v887_v24 = vadd.f32 %v1073_v12, %v886_v13 }
 0x2eb   : > { %v892_v20 = vadd.f32 %v887_v24, %v1393_v25 }
 0x2ed   : > { %896 = vst.msk [vmem:[%s352_s21 + $0x18] sm:$0xff] %vm616_vm1, %v892_v20 }
 0x2ee   : > { %1125 = shalt.err (!%p1122_p3)
}
 0x2ef   : > { %s1163_s11 = smov 128   ;;  %s1164_s21 = smov 8  }
 0x2f0   : > { %1015 = dma.vmem_to_hbm [thread:$0]  (%p1258_p5), %s911_s29, 512, %s913_s30, %s898_s17, %s1163_s11, %s1163_s11, %s1164_s21  }
 0x2f1 PF: > { %p1021_p4 = scmp.ge.s32.totalorder %s1160_s16, 2  ;;  %s927_s20 = sand.u32 1, %s1148_s13  }
 0x2f2   : > { %s928_s25 = scalar_lea.sflag [#allocation3], %s927_s20 }
 0x2f3   : > { %p1018_p7 = pnand %p1021_p4, %p1262_p6 }
 0x2f5   : > { %p1019_p8 = pneg %p1018_p7 }
 0x2f7   : > { %1143 = dma.done.wait (%p1019_p8), %s928_s25, 512  }
 0x2f8   : > { %1145 = vsyncadd (%p1019_p8), %s928_s25, 4294966784  ;;  %p20_p9 = scmp.ge.s32.totalorder %s1245_s19, 4   ;;  %s1472_s13 = smov %s1152_s14 }
 0x2f9   : > { %s1473_s14 = smov %s1156_s15  ;;  %s1474_s15 = smov %s1256_s22 }
 0x2fa   : > { %s1475_s16 = smov %s1245_s19  ;;  %22 = sbr.rel (!%p20_p9) target bundleno = 3 (0x3), region = 95 }
 0x2ff   :  { %934 = vsyncpa [#allocation3], 1 }
 0x300   :  { %936 = vsyncpa [#allocation3 + $0x1], 1 }

</bundles_post_ra>
